<compile_context>
chip_gen: v7x
topology: tpu7x:2x2x1
jax: 0.10.0
libtpu: 0.0.40
codegen_flags: <defaults>
</compile_context>

<pallas_src>
import jax
import jax.numpy as jnp
from jax.scipy import linalg as jsl
from jax.experimental import pallas as pl
from jax.experimental.pallas import tpu as pltpu


def value_densenet_kernel(x_ref, w1_ref, b1_ref, w2_ref, b2_ref, wf_ref, bf_ref, o_ref):
    """One packed batch tile: two (block-diag) Linear+Hardtanh layers + final block-diag Linear."""
    x = x_ref[...].astype(jnp.bfloat16)                # f32 -> bf16 cast on the VPU, in-kernel
    # Hidden layer 1: bf16 MXU matmul against block-diag W1, f32 accumulation / bias / Hardtanh.
    h = jnp.dot(x, w1_ref[...], preferred_element_type=jnp.float32) + b1_ref[...]
    h = jnp.clip(h, -1.0, 1.0)                         # Hardtanh (f32)
    # Hidden layer 2.
    h = jnp.dot(h.astype(jnp.bfloat16), w2_ref[...],
                preferred_element_type=jnp.float32) + b2_ref[...]
    h = jnp.clip(h, -1.0, 1.0)                         # Hardtanh (f32)
    # Final 64 -> 1 layer as a tiny (P*H2, P) block-diagonal matmul -> packed (tr, P) output.
    v = jnp.dot(h.astype(jnp.bfloat16), wf_ref[...],
                preferred_element_type=jnp.float32) + bf_ref[...]
    o_ref[...] = v.astype(o_ref.dtype)


def _round_up(n, m):
    return ((n + m - 1) // m) * m


def _padded_tile_bytes(shape, itemsize):
    """VMEM footprint of a 2-D block: lanes pad to 128, sublanes to the dtype tile."""
    sub = {4: 8, 2: 16, 1: 32}[itemsize]
    rows = _round_up(shape[-2], sub) if len(shape) >= 2 else 1
    cols = _round_up(shape[-1], 128)
    return rows * cols * itemsize


def _vmem_budget_bytes(tr, p, d, h1, h2):
    x_tile = 2 * _padded_tile_bytes((tr, p * d), 4)          # f32 x tile, double-buffered
    o_tile = 2 * _padded_tile_bytes((tr, p), 4)               # f32 packed output tile
    weights = 2 * (_padded_tile_bytes((p * d, p * h1), 2)
                   + _padded_tile_bytes((p * h1, p * h2), 2)
                   + _padded_tile_bytes((p * h2, p), 2)
                   + _padded_tile_bytes((1, p * h1), 4)
                   + _padded_tile_bytes((1, p * h2), 4)
                   + _padded_tile_bytes((1, p), 4))
    raw = x_tile + o_tile + weights
    return int(min(max(raw * 3 // 2, 16 << 20), 100 << 20))   # headroom; stays sane on v7x


def _default_pack_factor():
    """4 rows per 128-lane row on 256-wide-MXU chips (v6e/v7x); 2 on 128-wide MXUs (v4/v5)."""
    try:
        kind = jax.devices()[0].device_kind.lower()
    except Exception:
        return 4
    return 2 if ("v4" in kind or "v5" in kind) else 4


def value_densenet_forward(x, params, *, block_b=32768, pack=None):
    """x: (B, state_dim) float32.
    params: hidden weights transposed to (in, out); biases as (1, out);
            'wf' as a (1, hidden) row; 'bf' as (1, 1)."""
    B, D = x.shape
    H1 = params["w1"].shape[1]
    H2 = params["w2"].shape[1]
    P = _default_pack_factor() if pack is None else int(pack)

    # --- pack P batch rows per lane row (zero-copy, row-major contiguous reshape) ---
    x = x.astype(jnp.float32)
    B_pad = _round_up(B, P)
    if B_pad != B:
        x = jnp.pad(x, ((0, B_pad - B), (0, 0)))
    xp = x.reshape(B_pad // P, P * D)                          # (R, P*D) f32
    R = B_pad // P

    # --- packed-row tile: big, multiple of 16, and <= ~half the batch so v7x gets >= 2 steps ---
    tr_cap = max(16, (block_b // P) // 16 * 16)
    tr = min(tr_cap, _round_up(pl.cdiv(R, 2), 16), _round_up(R, 16))
    tr = max(tr, 16)
    num_tiles = pl.cdiv(R, tr)

    # --- block-diagonal weights (bf16 MXU inputs); biases / final bias stay f32 ---
    w1_blk = jsl.block_diag(*([params["w1"].astype(jnp.float32)] * P)).astype(jnp.bfloat16)
    w2_blk = jsl.block_diag(*([params["w2"].astype(jnp.float32)] * P)).astype(jnp.bfloat16)
    b1_blk = jnp.tile(params["b1"].astype(jnp.float32).reshape(1, -1), (1, P))
    b2_blk = jnp.tile(params["b2"].astype(jnp.float32).reshape(1, -1), (1, P))
    wf_col = params["wf"].astype(jnp.float32).reshape(-1, 1)                   # (H2, 1)
    wf_blk = jsl.block_diag(*([wf_col] * P)).astype(jnp.bfloat16)              # (P*H2, P)
    bf_blk = jnp.tile(params["bf"].astype(jnp.float32).reshape(1, 1), (1, P))  # (1, P)

    # Weights/biases: full-shape blocks with constant index_map -> fetched once, VMEM-resident.
    resident = lambda a: pl.BlockSpec(a.shape, lambda i: (0,) * a.ndim)

    grid_spec = pltpu.PrefetchScalarGridSpec(
        num_scalar_prefetch=0,
        grid=(num_tiles,),
        in_specs=[
            pl.BlockSpec((tr, P * D), lambda i: (i, 0)),       # packed x: tiled over batch
            resident(w1_blk), resident(b1_blk),
            resident(w2_blk), resident(b2_blk),
            resident(wf_blk), resident(bf_blk),
        ],
        out_specs=pl.BlockSpec((tr, P), lambda i: (i, 0)),     # packed (tr, P) output block
    )

    param_bytes = (w1_blk.size + w2_blk.size + wf_blk.size) * 2 \
        + (b1_blk.size + b2_blk.size + bf_blk.size) * 4
    cost = pl.CostEstimate(
        flops=2 * B * (D * H1 + H1 * H2 + H2),
        transcendentals=0,
        bytes_accessed=int(B * D * 4 + B * 4 + param_bytes),
    )

    out = pl.pallas_call(
        value_densenet_kernel,
        out_shape=jax.ShapeDtypeStruct((R, P), jnp.float32),
        grid_spec=grid_spec,
        compiler_params=pltpu.CompilerParams(
            dimension_semantics=("parallel",),                 # megacore sharding on v7x
            vmem_limit_bytes=_vmem_budget_bytes(tr, P, D, H1, H2),
        ),
        cost_estimate=cost,
    )(xp, w1_blk, b1_blk, w2_blk, b2_blk, wf_blk, bf_blk)

    # (R, P) row-major flatten restores original batch order; drop padded rows.
    return out.reshape(B_pad, 1)[:B]


def init_params(key, state_dim, hidden_sizes=(64, 64)):
    """PyTorch-default nn.Linear init (uniform +/- 1/sqrt(fan_in)).
    Hidden weights stored transposed as (in, out); final weight as a (1, hidden) row."""
    assert len(hidden_sizes) == 2, "kernel implements the module's default 2-hidden-layer net"
    h1, h2 = hidden_sizes
    key, k1w, k1b, k2w, k2b, kfw, kfb = jax.random.split(key, 7)

    def lin(kw, kb, fan_in, fan_out):
        bound = 1.0 / (fan_in ** 0.5)
        w = jax.random.uniform(kw, (fan_in, fan_out), jnp.float32, -bound, bound)
        b = jax.random.uniform(kb, (1, fan_out), jnp.float32, -bound, bound)
        return w, b

    params = {}
    params["w1"], params["b1"] = lin(k1w, k1b, state_dim, h1)
    params["w2"], params["b2"] = lin(k2w, k2b, h1, h2)
    wf, bf = lin(kfw, kfb, h2, 1)
    params["wf"] = wf.T            # (1, h2) row
    params["bf"] = bf              # (1, 1)
    return params


def reference_forward_f32(x, params):
    """Pure f32 reference (matches the PyTorch module numerics)."""
    h = jnp.clip(x @ params["w1"] + params["b1"], -1.0, 1.0)
    h = jnp.clip(h @ params["w2"] + params["b2"], -1.0, 1.0)
    return h @ params["wf"].T + params["bf"]


def reference_forward_mixed(x, params):
    """Same mixed precision as the kernel (bf16 matmul inputs, f32 accumulation)."""
    w1 = params["w1"].astype(jnp.bfloat16)
    w2 = params["w2"].astype(jnp.bfloat16)
    wf = params["wf"].astype(jnp.bfloat16)
    h = jnp.dot(x.astype(jnp.bfloat16), w1, preferred_element_type=jnp.float32) + params["b1"]
    h = jnp.clip(h, -1.0, 1.0)
    h = jnp.dot(h.astype(jnp.bfloat16), w2, preferred_element_type=jnp.float32) + params["b2"]
    h = jnp.clip(h, -1.0, 1.0)
    return jnp.dot(h.astype(jnp.bfloat16), wf.T,
                   preferred_element_type=jnp.float32) + params["bf"]


if __name__ == "__main__":
    key = jax.random.PRNGKey(0)
    k_param, k_x1, k_x2 = jax.random.split(key, 3)

    state_dim = 32
    params = init_params(k_param, state_dim, hidden_sizes=(64, 64))

    # Small case (single tile, auto pack factor).
    x_small = jax.random.normal(k_x1, (8, state_dim), jnp.float32)
    v_small = jax.block_until_ready(value_densenet_forward(x_small, params))
    assert v_small.shape == (8, 1)
    assert jnp.allclose(v_small, reference_forward_mixed(x_small, params), atol=1e-4, rtol=1e-4)
    assert jnp.allclose(v_small, reference_forward_f32(x_small, params), atol=3e-2, rtol=3e-2)

    # Multi-tile case with a ragged batch (exercises the pipelined grid + partial last tile).
    x_big = jax.random.normal(k_x2, (300, state_dim), jnp.float32)
    v_big = jax.block_until_ready(value_densenet_forward(x_big, params, block_b=128))
    assert v_big.shape == (300, 1)
    assert jnp.allclose(v_big, reference_forward_mixed(x_big, params), atol=1e-4, rtol=1e-4)
    assert jnp.allclose(v_big, reference_forward_f32(x_big, params), atol=3e-2, rtol=3e-2)

    # Explicit 2-way packing path (what the wrapper auto-selects on v4/v5 chips).
    v_p2 = jax.block_until_ready(value_densenet_forward(x_big, params, block_b=128, pack=2))
    assert v_p2.shape == (300, 1)
    assert jnp.allclose(v_p2, reference_forward_mixed(x_big, params), atol=1e-4, rtol=1e-4)
    assert jnp.allclose(v_p2, reference_forward_f32(x_big, params), atol=3e-2, rtol=3e-2)

    print("KERNEL_OK")
</pallas_src>

<mosaic_0001>
module attributes {stable_mosaic.version = 11 : i64} {
  func.func @value_densenet_kernel(%arg0: i32, %arg1: memref<16x128xf32, #tpu.memory_space<vmem>>, %arg2: memref<128x256xbf16, #tpu.memory_space<vmem>>, %arg3: memref<1x256xf32, #tpu.memory_space<vmem>>, %arg4: memref<256x256xbf16, #tpu.memory_space<vmem>>, %arg5: memref<1x256xf32, #tpu.memory_space<vmem>>, %arg6: memref<256x4xbf16, #tpu.memory_space<vmem>>, %arg7: memref<1x4xf32, #tpu.memory_space<vmem>>, %arg8: memref<16x4xf32, #tpu.memory_space<vmem>>) attributes {dimension_semantics = [#tpu.dimension_semantics<parallel>], iteration_bounds = array<i64: 1>, scalar_prefetch = 0 : i64, scratch_operands = 0 : i64, tpu.core_type = #tpu.core_type<tc>, window_params = [{transform_indices = @transform_0, window_bounds = array<i64: 16, 128>}, {pipeline_mode = #tpu.pipeline_mode<synchronous>, transform_indices = @transform_1, window_bounds = array<i64: 128, 256>}, {pipeline_mode = #tpu.pipeline_mode<synchronous>, transform_indices = @transform_2, window_bounds = array<i64: 1, 256>}, {pipeline_mode = #tpu.pipeline_mode<synchronous>, transform_indices = @transform_3, window_bounds = array<i64: 256, 256>}, {pipeline_mode = #tpu.pipeline_mode<synchronous>, transform_indices = @transform_4, window_bounds = array<i64: 1, 256>}, {pipeline_mode = #tpu.pipeline_mode<synchronous>, transform_indices = @transform_5, window_bounds = array<i64: 256, 4>}, {pipeline_mode = #tpu.pipeline_mode<synchronous>, transform_indices = @transform_6, window_bounds = array<i64: 1, 4>}, {transform_indices = @transform_7, window_bounds = array<i64: 16, 4>}]} {
    %c0 = arith.constant 0 : index
    %c0_0 = arith.constant 0 : index
    %0 = vector.load %arg1[%c0, %c0_0] : memref<16x128xf32, #tpu.memory_space<vmem>>, vector<16x128xf32>
    %1 = arith.truncf %0 : vector<16x128xf32> to vector<16x128xbf16>
    %c0_1 = arith.constant 0 : index
    %c0_2 = arith.constant 0 : index
    %2 = vector.load %arg2[%c0_1, %c0_2] : memref<128x256xbf16, #tpu.memory_space<vmem>>, vector<128x256xbf16>
    %cst = arith.constant dense<0.000000e+00> : vector<16x256xf32>
    %3 = tpu.matmul %1, %2, %cst {dimension_numbers = #tpu.dot_dimension_numbers<[1], [0], [0], [1], [0, 0, 1, 1], [], []>} : vector<16x128xbf16>, vector<128x256xbf16>, vector<16x256xf32> -> vector<16x256xf32>
    %c0_3 = arith.constant 0 : index
    %c0_4 = arith.constant 0 : index
    %4 = vector.load %arg3[%c0_3, %c0_4] : memref<1x256xf32, #tpu.memory_space<vmem>>, vector<1x256xf32>
    %5 = vector.broadcast %4 : vector<1x256xf32> to vector<16x256xf32>
    %6 = arith.addf %3, %5 : vector<16x256xf32>
    %cst_5 = arith.constant -1.000000e+00 : f32
    %cst_6 = arith.constant 1.000000e+00 : f32
    %7 = vector.broadcast %cst_5 : f32 to vector<16x256xf32>
    %8 = arith.maximumf %7, %6 : vector<16x256xf32>
    %9 = vector.broadcast %cst_6 : f32 to vector<16x256xf32>
    %10 = arith.minimumf %9, %8 : vector<16x256xf32>
    %11 = arith.truncf %10 : vector<16x256xf32> to vector<16x256xbf16>
    %c0_7 = arith.constant 0 : index
    %c0_8 = arith.constant 0 : index
    %12 = vector.load %arg4[%c0_7, %c0_8] : memref<256x256xbf16, #tpu.memory_space<vmem>>, vector<256x256xbf16>
    %cst_9 = arith.constant dense<0.000000e+00> : vector<16x256xf32>
    %13 = tpu.matmul %11, %12, %cst_9 {dimension_numbers = #tpu.dot_dimension_numbers<[1], [0], [0], [1], [0, 0, 1, 1], [], []>} : vector<16x256xbf16>, vector<256x256xbf16>, vector<16x256xf32> -> vector<16x256xf32>
    %c0_10 = arith.constant 0 : index
    %c0_11 = arith.constant 0 : index
    %14 = vector.load %arg5[%c0_10, %c0_11] : memref<1x256xf32, #tpu.memory_space<vmem>>, vector<1x256xf32>
    %15 = vector.broadcast %14 : vector<1x256xf32> to vector<16x256xf32>
    %16 = arith.addf %13, %15 : vector<16x256xf32>
    %cst_12 = arith.constant -1.000000e+00 : f32
    %cst_13 = arith.constant 1.000000e+00 : f32
    %17 = vector.broadcast %cst_12 : f32 to vector<16x256xf32>
    %18 = arith.maximumf %17, %16 : vector<16x256xf32>
    %19 = vector.broadcast %cst_13 : f32 to vector<16x256xf32>
    %20 = arith.minimumf %19, %18 : vector<16x256xf32>
    %21 = arith.truncf %20 : vector<16x256xf32> to vector<16x256xbf16>
    %c0_14 = arith.constant 0 : index
    %c0_15 = arith.constant 0 : index
    %22 = vector.load %arg6[%c0_14, %c0_15] : memref<256x4xbf16, #tpu.memory_space<vmem>>, vector<256x4xbf16>
    %cst_16 = arith.constant dense<0.000000e+00> : vector<16x4xf32>
    %23 = tpu.matmul %21, %22, %cst_16 {dimension_numbers = #tpu.dot_dimension_numbers<[1], [0], [0], [1], [0, 0, 1, 1], [], []>} : vector<16x256xbf16>, vector<256x4xbf16>, vector<16x4xf32> -> vector<16x4xf32>
    %c0_17 = arith.constant 0 : index
    %c0_18 = arith.constant 0 : index
    %24 = vector.load %arg7[%c0_17, %c0_18] : memref<1x4xf32, #tpu.memory_space<vmem>>, vector<1x4xf32>
    %25 = vector.broadcast %24 : vector<1x4xf32> to vector<16x4xf32>
    %26 = arith.addf %23, %25 : vector<16x4xf32>
    %c0_19 = arith.constant 0 : index
    %c0_20 = arith.constant 0 : index
    %27 = vector.load %arg8[%c0_19, %c0_20] : memref<16x4xf32, #tpu.memory_space<vmem>>, vector<16x4xf32>
    tpu.vector_store %arg8[%c0_19, %c0_20], %26 {strides = array<i32>} : memref<16x4xf32, #tpu.memory_space<vmem>>, vector<16x4xf32>,
    return
  }
  func.func @transform_0(%arg0: i32) -> (i32, i32) {
    %c0_i32 = arith.constant 0 : i32
    %c0_i32_0 = arith.constant 0 : i32
    return %arg0, %c0_i32 : i32, i32
  }
  func.func @transform_1(%arg0: i32) -> (i32, i32) {
    %c0_i32 = arith.constant 0 : i32
    %c0_i32_0 = arith.constant 0 : i32
    %c0_i32_1 = arith.constant 0 : i32
    return %c0_i32, %c0_i32_0 : i32, i32
  }
  func.func @transform_2(%arg0: i32) -> (i32, i32) {
    %c0_i32 = arith.constant 0 : i32
    %c0_i32_0 = arith.constant 0 : i32
    %c0_i32_1 = arith.constant 0 : i32
    return %c0_i32, %c0_i32_0 : i32, i32
  }
  func.func @transform_3(%arg0: i32) -> (i32, i32) {
    %c0_i32 = arith.constant 0 : i32
    %c0_i32_0 = arith.constant 0 : i32
    %c0_i32_1 = arith.constant 0 : i32
    return %c0_i32, %c0_i32_0 : i32, i32
  }
  func.func @transform_4(%arg0: i32) -> (i32, i32) {
    %c0_i32 = arith.constant 0 : i32
    %c0_i32_0 = arith.constant 0 : i32
    %c0_i32_1 = arith.constant 0 : i32
    return %c0_i32, %c0_i32_0 : i32, i32
  }
  func.func @transform_5(%arg0: i32) -> (i32, i32) {
    %c0_i32 = arith.constant 0 : i32
    %c0_i32_0 = arith.constant 0 : i32
    %c0_i32_1 = arith.constant 0 : i32
    return %c0_i32, %c0_i32_0 : i32, i32
  }
  func.func @transform_6(%arg0: i32) -> (i32, i32) {
    %c0_i32 = arith.constant 0 : i32
    %c0_i32_0 = arith.constant 0 : i32
    %c0_i32_1 = arith.constant 0 : i32
    return %c0_i32, %c0_i32_0 : i32, i32
  }
  func.func @transform_7(%arg0: i32) -> (i32, i32) {
    %c0_i32 = arith.constant 0 : i32
    %c0_i32_0 = arith.constant 0 : i32
    return %arg0, %c0_i32 : i32, i32
  }
}

</mosaic_0001>

<bundles_post_ra>
// kernel: tpu_custom_call.1
= control target key start
LH: loop header
LB: loop body
LE: loop exit
PB: predicated region body
PF: predicated region fallthrough
CT: control target
= control target key end

     0   :  { %12 = vsyncpa [#allocation3], 0  ;;  %s1079_s0 = inlined_call_operand.vmem [shape: f32[2,128], index: 0, kind: input, shape index: {}]   ;;  %s1080_s1 = inlined_call_operand.vmem [shape: bf16[128,256], index: 1, kind: input, shape index: {}]   ;;  %s1081_s2 = inlined_call_operand.vmem [shape: f32[1,256], index: 2, kind: input, shape index: {}]   ;;  %s1082_s3 = inlined_call_operand.hbm [shape: bf16[256,256], index: 3, kind: input, shape index: {}]   ;;  %s1083_s4 = inlined_call_operand.vmem [shape: f32[1,256], index: 4, kind: input, shape index: {}]   ;;  %s1084_s5 = inlined_call_operand.vmem [shape: bf16[256,4], index: 5, kind: input, shape index: {}]   ;;  %s1085_s6 = inlined_call_operand.vmem [shape: f32[1,4], index: 6, kind: input, shape index: {}]   ;;  %s1086_s7 = inlined_call_operand.hbm [shape: f32[2,4], index: 7, kind: output, shape index: {}]  }
   0x1   :  { %13 = vsyncpa [#allocation4], 0  ;;  %s897_s24 = smov [#allocation2]   ;;  %s849_s28 = scalar_lea.hbm %s1082_s3, 4096 }
   0x2   :  { %s25_s25 = sshll.u32 %s897_s24, 4  ;;  %p850_p0 = scmp.ne.s32.totalorder %s1082_s3, %s849_s28  ;;  %s26_s25 = int_to_ptr.vmem [resolvable:$true] %s25_s25 }
   0x3   :  { %p853_p1 = scmp.lt.u32.totalorder %s849_s28, %s1082_s3 }
   0x5   :  { %p855_p2 = pnand %p853_p1, %p850_p0 }
   0x7   :  { %858 = shalt.err (!%p855_p2)
}
   0x8   :  { %s859_s10 = scalar_lea.vmem %s26_s25, 4096  ;;  %p864_p4 = scmp.lt.s32.totalorder %s26_s25, %s26_s25 }
   0x9   :  { %p860_p3 = scmp.ne.s32.totalorder %s26_s25, %s859_s10  ;;  %p865_p5 = scmp.lt.s32.totalorder %s859_s10, %s859_s10 }
   0xb   :  { %p866_p6 = por %p865_p5, %p864_p4 }
   0xd   :  { %p867_p7 = pnand %p866_p6, %p860_p3 }
   0xf   :  { %870 = shalt.err (!%p867_p7)
}
  0x10   :  { %s898_s11 = smov 128   ;;  %s899_s12 = smov 8  }
  0x11   :  { %31 = dma.hbm_to_vmem [thread:$0]  %s1082_s3, 4096, %s26_s25, [#allocation3], %s898_s11, %s898_s11, %s899_s12  }
  0x12   :  { %893 = dma.done.wait [#allocation3], 4096  }
  0x13   :  { %894 = vsyncadd [#allocation3], 4294963200  ;;  %v900_v0 = vmov 0   ;;  %v761_v1 = vld [vmem:[%s1080_s1 + $0x4] ss:$8 sps:$4 sm:$0xff]   ;;  %v837_v56 = vld [vmem:[%s1084_s5 + $0x50] sm:$0xff]   ;;  %v63_v63 = vlaneseq }
  0x14   :  { %185 = vmatprep.mubr.bf16.mxu0 %v900_v0  ;;  %v763_v2 = vld [vmem:[%s1080_s1] ss:$8 sps:$4 sm:$0xff]   ;;  %153 = vmatprep.subr.bf16.mxu0 %v761_v1  ;;  %v764_v3 = vld [vmem:[%s1080_s1 + $0x14] ss:$8 sps:$4 sm:$0xff]   ;;  %v766_v4 = vld [vmem:[%s1080_s1 + $0x10] ss:$8 sps:$4 sm:$0xff]  }
  0x15   :  { %154 = vmatpush1.bf16.msra.mxu0 %v763_v2  ;;  %v767_v5 = vld [vmem:[%s1080_s1 + $0x24] ss:$8 sps:$4 sm:$0xff]   ;;  %v769_v6 = vld [vmem:[%s1080_s1 + $0x20] ss:$8 sps:$4 sm:$0xff]   ;;  %v770_v7 = vld [vmem:[%s1080_s1 + $0x34] ss:$8 sps:$4 sm:$0xff]  }
  0x16   :  { %155 = vmatprep.subr.bf16.mxu0 %v764_v3  ;;  %v772_v8 = vld [vmem:[%s1080_s1 + $0x30] ss:$8 sps:$4 sm:$0xff]   ;;  %v773_v9 = vld [vmem:[%s1080_s1 + $0x44] ss:$8 sps:$4 sm:$0xff]   ;;  %v787_v11 = vld [vmem:[#allocation2] ss:$8 sps:$4 sm:$0xff]  }
  0x17   :  { %v785_v10 = vld [vmem:[#allocation2 + $0x4] ss:$8 sps:$4 sm:$0xff]   ;;  %v788_v12 = vld [vmem:[#allocation2 + $0x14] ss:$8 sps:$4 sm:$0xff]   ;;  %v775_v13 = vld [vmem:[%s1080_s1 + $0x40] ss:$8 sps:$4 sm:$0xff]  }
  0x18   :  { %410 = vmatprep.subr.bf16.mxu1 %v785_v10  ;;  %v790_v14 = vld [vmem:[#allocation2 + $0x10] ss:$8 sps:$4 sm:$0xff]   ;;  %v776_v15 = vld [vmem:[%s1080_s1 + $0x54] ss:$8 sps:$4 sm:$0xff]   ;;  %v791_v16 = vld [vmem:[#allocation2 + $0x24] ss:$8 sps:$4 sm:$0xff]  }
  0x19   :  { %156 = vmatpush1.bf16.msra.mxu0 %v766_v4  ;;  %411 = vmatpush1.bf16.msra.mxu1 %v787_v11  ;;  %v778_v17 = vld [vmem:[%s1080_s1 + $0x50] ss:$8 sps:$4 sm:$0xff]   ;;  %v793_v18 = vld [vmem:[#allocation2 + $0x20] ss:$8 sps:$4 sm:$0xff]   ;;  %v779_v19 = vld [vmem:[%s1080_s1 + $0x64] ss:$8 sps:$4 sm:$0xff]  }
  0x1a   :  { %157 = vmatprep.subr.bf16.mxu0 %v767_v5  ;;  %412 = vmatprep.subr.bf16.mxu1 %v788_v12  ;;  %v794_v20 = vld [vmem:[#allocation2 + $0x34] ss:$8 sps:$4 sm:$0xff]   ;;  %v781_v21 = vld [vmem:[%s1080_s1 + $0x60] ss:$8 sps:$4 sm:$0xff]   ;;  %v796_v22 = vld [vmem:[#allocation2 + $0x30] ss:$8 sps:$4 sm:$0xff]  }
  0x1b   :  { %v782_v23 = vld [vmem:[%s1080_s1 + $0x74] ss:$8 sps:$4 sm:$0xff]   ;;  %v797_v24 = vld [vmem:[#allocation2 + $0x44] ss:$8 sps:$4 sm:$0xff]   ;;  %v784_v25 = vld [vmem:[%s1080_s1 + $0x70] ss:$8 sps:$4 sm:$0xff]  }
  0x1c   :  { %v42_v26 = vld [vmem:[%s1079_s0] sm:$0xff]  ;;  %v43_v27 = vld [vmem:[%s1079_s0 + $0x8] sm:$0xff]  ;;  %v800_v29 = vld [vmem:[#allocation2 + $0x54] ss:$8 sps:$4 sm:$0xff]   ;;  %v64_v0 = vshrl.u32 %v63_v63, 7  ;;  %vm639_vm0 = vcmask 31744  }
  0x1d   :  { %158 = vmatpush1.bf16.msra.mxu0 %v769_v6  ;;  %413 = vmatpush1.bf16.msra.mxu1 %v790_v14  ;;  %v799_v28 = vld [vmem:[#allocation2 + $0x40] ss:$8 sps:$4 sm:$0xff]   ;;  %v802_v30 = vld [vmem:[#allocation2 + $0x50] ss:$8 sps:$4 sm:$0xff]   ;;  %v44_v31 = vpack.c.bf16 %v43_v27, %v42_v26  ;;  %v803_v32 = vld [vmem:[#allocation2 + $0x64] ss:$8 sps:$4 sm:$0xff]  }
  0x1e   :  { %159 = vmatprep.subr.bf16.mxu0 %v770_v7  ;;  %414 = vmatprep.subr.bf16.mxu1 %v791_v16  ;;  %v805_v33 = vld [vmem:[#allocation2 + $0x60] ss:$8 sps:$4 sm:$0xff]   ;;  %v806_v34 = vld [vmem:[#allocation2 + $0x74] ss:$8 sps:$4 sm:$0xff]   ;;  %v808_v35 = vld [vmem:[#allocation2 + $0x70] ss:$8 sps:$4 sm:$0xff]  }
  0x1f   :  { %v809_v36 = vld [vmem:[#allocation2 + $0x84] ss:$8 sps:$4 sm:$0xff]   ;;  %v811_v37 = vld [vmem:[#allocation2 + $0x80] ss:$8 sps:$4 sm:$0xff]   ;;  %v812_v38 = vld [vmem:[#allocation2 + $0x94] ss:$8 sps:$4 sm:$0xff]  }
  0x20   :  { %v814_v39 = vld [vmem:[#allocation2 + $0x90] ss:$8 sps:$4 sm:$0xff]   ;;  %v815_v40 = vld [vmem:[#allocation2 + $0xa4] ss:$8 sps:$4 sm:$0xff]   ;;  %v817_v41 = vld [vmem:[#allocation2 + $0xa0] ss:$8 sps:$4 sm:$0xff]  }
  0x21   :  { %160 = vmatpush1.bf16.msra.mxu0 %v772_v8  ;;  %415 = vmatpush1.bf16.msra.mxu1 %v793_v18  ;;  %v818_v42 = vld [vmem:[#allocation2 + $0xb4] ss:$8 sps:$4 sm:$0xff]   ;;  %v820_v43 = vld [vmem:[#allocation2 + $0xb0] ss:$8 sps:$4 sm:$0xff]   ;;  %v821_v44 = vld [vmem:[#allocation2 + $0xc4] ss:$8 sps:$4 sm:$0xff]  }
  0x22   :  { %161 = vmatprep.subr.bf16.mxu0 %v773_v9  ;;  %416 = vmatprep.subr.bf16.mxu1 %v794_v20  ;;  %v823_v45 = vld [vmem:[#allocation2 + $0xc0] ss:$8 sps:$4 sm:$0xff]   ;;  %v824_v46 = vld [vmem:[#allocation2 + $0xd4] ss:$8 sps:$4 sm:$0xff]   ;;  %v826_v47 = vld [vmem:[#allocation2 + $0xd0] ss:$8 sps:$4 sm:$0xff]  }
  0x23   :  { %v827_v48 = vld [vmem:[#allocation2 + $0xe4] ss:$8 sps:$4 sm:$0xff]   ;;  %v829_v49 = vld [vmem:[#allocation2 + $0xe0] ss:$8 sps:$4 sm:$0xff]   ;;  %v830_v50 = vld [vmem:[#allocation2 + $0xf4] ss:$8 sps:$4 sm:$0xff]  }
  0x24   :  { %v832_v51 = vld [vmem:[#allocation2 + $0xf0] ss:$8 sps:$4 sm:$0xff]   ;;  %v833_v52 = vld [vmem:[%s1084_s5 + $0x40] sm:$0xff]   ;;  %v835_v54 = vld [vmem:[%s1084_s5 + $0x48] sm:$0xff]   ;;  %v65_v1 = vsub.s32 0, %v64_v0  ;;  %v69_v3 = vsub.s32 1, %v64_v0 }
  0x25   :  { %162 = vmatpush1.bf16.msra.mxu0 %v775_v13  ;;  %417 = vmatpush1.bf16.msra.mxu1 %v796_v22  ;;  %v834_v53 = vld [vmem:[%s1084_s5] sm:$0xff]   ;;  %v836_v55 = vld [vmem:[%s1084_s5 + $0x8] sm:$0xff]   ;;  %v838_v57 = vld [vmem:[%s1084_s5 + $0x10] sm:$0xff]  }
  0x26   :  { %163 = vmatprep.subr.bf16.mxu0 %v776_v15  ;;  %418 = vmatprep.subr.bf16.mxu1 %v797_v24  ;;  %v839_v58 = vld [vmem:[%s1084_s5 + $0x58] sm:$0xff]   ;;  %v841_v60 = vld [vmem:[%s1084_s5 + $0x60] sm:$0xff]   ;;  %v843_v62 = vld [vmem:[%s1084_s5 + $0x68] sm:$0xff]  }
  0x27   :  { %v840_v59 = vld [vmem:[%s1084_s5 + $0x18] sm:$0xff]   ;;  %v842_v61 = vld [vmem:[%s1084_s5 + $0x20] sm:$0xff]   ;;  %v844_v20 = vld [vmem:[%s1084_s5 + $0x28] sm:$0xff]  }
  0x28   :  { %v61_v2 = vld [vmem:[%s1081_s2] sm:$0x3]  ;;  %v846_v22 = vld [vmem:[%s1084_s5 + $0x30] sm:$0xff]   ;;  %v848_v24 = vld [vmem:[%s1084_s5 + $0x38] sm:$0xff]  }
  0x29   :  { %164 = vmatpush1.bf16.msra.mxu0 %v778_v17  ;;  %419 = vmatpush1.bf16.msra.mxu1 %v799_v28  ;;  %v66_v4 = vrot.slane %v61_v2, %v65_v1  ;;  %v70_v5 = vrot.slane %v61_v2, %v69_v3 }
  0x2a   :  { %165 = vmatprep.subr.bf16.mxu0 %v779_v19  ;;  %420 = vmatprep.subr.bf16.mxu1 %v800_v29 }
  0x2d   :  { %166 = vmatpush1.bf16.msra.mxu0 %v781_v21  ;;  %421 = vmatpush1.bf16.msra.mxu1 %v802_v30  ;;  %v845_v21 = vld [vmem:[%s1084_s5 + $0x70] sm:$0xff]  }
  0x2e   :  { %167 = vmatprep.subr.bf16.mxu0 %v782_v23  ;;  %422 = vmatprep.subr.bf16.mxu1 %v803_v32  ;;  %v847_v23 = vld [vmem:[%s1084_s5 + $0x78] sm:$0xff]  }
  0x31   :  { %168 = vmatpush1.bf16.msra.mxu0 %v784_v25  ;;  %423 = vmatpush1.bf16.msra.mxu1 %v805_v33  ;;  %v238_v25 = vld [vmem:[%s1083_s4] sm:$0x3] }
  0x32   :  { %424 = vmatprep.subr.bf16.mxu1 %v806_v34  ;;  %732 = vmatprep.subr.bf16.mxu0 %v833_v52  ;;  %v243_v26 = vrot.slane %v238_v25, %v65_v1  ;;  %v247_v27 = vrot.slane %v238_v25, %v69_v3 }
  0x34   :  { %186 = vmatmul.mubr.bf16.vlgmr.msra.gmra.mrb[0].mxu0 %v44_v31 }
  0x35   :  { %425 = vmatpush1.bf16.msra.mxu1 %v808_v35  ;;  %733 = vmatpush3.bf16.msra.mxu0 %v834_v53 }
  0x36   :  { %426 = vmatprep.subr.bf16.mxu1 %v809_v36  ;;  %734 = vmatprep.subr.bf16.mxu0 %v835_v54 }
  0x39   :  { %427 = vmatpush1.bf16.msra.mxu1 %v811_v37  ;;  %735 = vmatpush3.bf16.msra.mxu0 %v836_v55 }
  0x3a   :  { %428 = vmatprep.subr.bf16.mxu1 %v812_v38  ;;  %736 = vmatprep.subr.bf16.mxu0 %v837_v56 }
  0x3d   :  { %429 = vmatpush1.bf16.msra.mxu1 %v814_v39  ;;  %737 = vmatpush3.bf16.msra.mxu0 %v838_v57 }
  0x3e   :  { %430 = vmatprep.subr.bf16.mxu1 %v815_v40  ;;  %738 = vmatprep.subr.bf16.mxu0 %v839_v58 }
  0x41   :  { %431 = vmatpush1.bf16.msra.mxu1 %v817_v41  ;;  %739 = vmatpush3.bf16.msra.mxu0 %v840_v59 }
  0x42   :  { %432 = vmatprep.subr.bf16.mxu1 %v818_v42  ;;  %740 = vmatprep.subr.bf16.mxu0 %v841_v60 }
  0x45   :  { %433 = vmatpush1.bf16.msra.mxu1 %v820_v43  ;;  %741 = vmatpush3.bf16.msra.mxu0 %v842_v61  ;;  %v715_v43 = vld [vmem:[%s1085_s6] ss:$0 sm:$0xff] }
  0x46   :  { %434 = vmatprep.subr.bf16.mxu1 %v821_v44  ;;  %742 = vmatprep.subr.bf16.mxu0 %v843_v62 }
  0x49   :  { %435 = vmatpush1.bf16.msra.mxu1 %v823_v45  ;;  %743 = vmatpush3.bf16.msra.mxu0 %v844_v20 }
  0x4a   :  { %436 = vmatprep.subr.bf16.mxu1 %v824_v46  ;;  %744 = vmatprep.subr.bf16.mxu0 %v845_v21 }
  0x4d   :  { %437 = vmatpush1.bf16.msra.mxu1 %v826_v47  ;;  %745 = vmatpush3.bf16.msra.mxu0 %v846_v22 }
  0x4e   :  { %438 = vmatprep.subr.bf16.mxu1 %v827_v48  ;;  %746 = vmatprep.subr.bf16.mxu0 %v847_v23 }
  0x51   :  { %439 = vmatpush1.bf16.msra.mxu1 %v829_v49  ;;  %747 = vmatpush3.bf16.msra.mxu0 %v848_v24 }
  0x52   :  { %440 = vmatprep.subr.bf16.mxu1 %v830_v50 }
  0x55   :  { %441 = vmatpush1.bf16.msra.mxu1 %v832_v51 }
 0x107   :  { %v187_v6 = vpop.f32.mrb[0].mxu0 }
 0x108   :  { %v188_v7 = vadd.f32 %v187_v6, %v66_v4  ;;  %v189_v8 = vpop.f32.mrb[1].mxu0 }
 0x109   :  { %v190_v9 = vadd.f32 %v189_v8, %v70_v5  ;;  %v191_v10 = vpop.f32.mrb[2].mxu0 }
 0x10a   :  { %v192_v11 = vadd.f32 %v191_v10, %v66_v4  ;;  %v193_v12 = vpop.f32.mrb[3].mxu0  ;;  %v675_v14 = vclamps-f32 %v188_v7, 1.0 }
 0x10b   :  { %v194_v13 = vadd.f32 %v193_v12, %v70_v5  ;;  %v676_v16 = vclamps-f32 %v190_v9, 1.0 }
 0x10c   :  { %v677_v15 = vclamps-f32 %v192_v11, 1.0 }
 0x10d   :  { %v678_v17 = vclamps-f32 %v194_v13, 1.0 }
 0x10e   :  { %v204_v18 = vpack.c.bf16 %v677_v15, %v675_v14 }
 0x10f   :  { %v205_v19 = vpack.c.bf16 %v678_v17, %v676_v16 }
 0x111   :  { %442 = vmatprep.mubr.bf16.mxu1 %v205_v19 }
 0x112   :  { %443 = vmatmul.mubr.bf16.vlgmr.msra.gmra.mrb[0].mxu1 %v204_v18 }
 0x1e5   :  { %v444_v28 = vpop.f32.mrb[0].mxu1 }
 0x1e6   :  { %v445_v29 = vadd.f32 %v444_v28, %v243_v26  ;;  %v446_v30 = vpop.f32.mrb[1].mxu1 }
 0x1e7   :  { %v447_v31 = vadd.f32 %v446_v30, %v247_v27  ;;  %v448_v32 = vpop.f32.mrb[2].mxu1 }
 0x1e8   :  { %v449_v33 = vadd.f32 %v448_v32, %v243_v26  ;;  %v450_v34 = vpop.f32.mrb[3].mxu1  ;;  %v711_v36 = vclamps-f32 %v445_v29, 1.0 }
 0x1e9   :  { %v451_v35 = vadd.f32 %v450_v34, %v247_v27  ;;  %v712_v38 = vclamps-f32 %v447_v31, 1.0 }
 0x1ea   :  { %v713_v37 = vclamps-f32 %v449_v33, 1.0 }
 0x1eb   :  { %v714_v39 = vclamps-f32 %v451_v35, 1.0 }
 0x1ec   :  { %v461_v40 = vpack.c.bf16 %v713_v37, %v711_v36 }
 0x1ed   :  { %v462_v41 = vpack.c.bf16 %v714_v39, %v712_v38 }
 0x1ef   :  { %630 = vmatprep.mubr.bf16.mxu0 %v462_v41 }
 0x1f0   :  { %631 = vmatmul.mubr.bf16.vlgmr.msra.gmra.mrb[4].mxu0 %v461_v40 }
 0x2c3   :  { %v748_v42 = vpop.f32.mrb[4].mxu0 }
 0x2c4   :  { %v749_v44 = vpop.f32.mrb[5].mxu0 }
 0x2c5   :  { %v750_v45 = vadd.f32 %v749_v44, %v748_v42  ;;  %v751_v46 = vpop.f32.mrb[6].mxu0 }
 0x2c6   :  { %v752_v47 = vpop.f32.mrb[7].mxu0 }
 0x2c7   :  { %v633_v48 = vadd.f32 %v750_v45, %v715_v43  ;;  %v753_v49 = vadd.f32 %v752_v47, %v751_v46 }
 0x2c9   :  { %640 = vst.msk [vmem:[#allocation5] sm:$0xff] %vm639_vm0, %v633_v48  ;;  %v636_v50 = vadd.f32 %v753_v49, %v715_v43 }
 0x2cb   :  { %641 = vst.msk [vmem:[#allocation5 + $0x8] sm:$0xff] %vm639_vm0, %v636_v50 }
 0x2cc   :  { %646 = vsyncadd [#allocation4], 224  ;;  %s901_s10 = smov [#allocation5]  }
 0x2cd   :  { %s647_s11 = sshll.u32 %s901_s10, 4  ;;  %s648_s11 = int_to_ptr.vmem [resolvable:$true] %s647_s11 }
 0x2ce   :  { %s871_s12 = scalar_lea.vmem %s648_s11, 32  ;;  %s875_s13 = scalar_lea.vmem %s648_s11, 256 }
 0x2cf   :  { %p872_p8 = scmp.ne.s32.totalorder %s648_s11, %s871_s12  ;;  %p876_p9 = scmp.lt.s32.totalorder %s648_s11, %s648_s11 }
 0x2d0   :  { %p877_p10 = scmp.lt.s32.totalorder %s875_s13, %s871_s12 }
 0x2d2   :  { %p878_p11 = por %p877_p10, %p876_p9 }
 0x2d4   :  { %p879_p12 = pnand %p878_p11, %p872_p8 }
 0x2d6   :  { %882 = shalt.err (!%p879_p12)
}
 0x2d7   :  { %s883_s15 = scalar_lea.hbm %s1086_s7, 32 }
 0x2d8   :  { %p884_p13 = scmp.ne.s32.totalorder %s1086_s7, %s883_s15  ;;  %p887_p0 = scmp.lt.u32.totalorder %s883_s15, %s1086_s7 }
 0x2da   :  { %p889_p1 = pnand %p887_p0, %p884_p13 }
 0x2dc   :  { %892 = shalt.err (!%p889_p1)
}
 0x2dd   :  { %s902_s20 = smov 32   ;;  %s903_s21 = smov 2  }
 0x2de   :  { %653 = dma.vmem_to_hbm [thread:$0]  %s648_s11, 32, %s1086_s7, [#allocation4], %s902_s20, %s902_s20, %s903_s21  }
 0x2df   :  { %895 = dma.done.wait [#allocation4], 256  }
 0x2e0   :  { %896 = vsyncadd [#allocation4], 4294967040 }
 0x2e1   :  { %657 = vsyncpa [#allocation3], 1 }
 0x2e2   :  { %658 = vsyncpa [#allocation4], 1 }

</bundles_post_ra>
